<compile_context>
chip_gen: v5e
topology: v5e:2x2
jax: 0.10.0
libtpu: 0.0.40
codegen_flags: <defaults>
</compile_context>

<pallas_src>
import functools

import jax
import jax.numpy as jnp
from jax.experimental import pallas as pl
from jax.experimental.pallas import tpu as pltpu


def _round_up(x, m):
    return ((x + m - 1) // m) * m


# ----------------------------------------------------------------------------
# Fast path: C divides 128 -> lane-dense packed output view.
# ----------------------------------------------------------------------------
def _gaussian_packed_kernel(r_ref, e_ref, c_ref, o_ref, *, neg_inv_width):
    # r_ref: (rows, P)  f32  -- P consecutive radii per 128-lane output row
    # e_ref: (P, 128)   bf16 -- E[j, l] = 1.0 iff l // C == j (lane expansion)
    # c_ref: (1, 128)   f32  -- centers tiled along lanes: c_ref[0, l] = centers[l % C]
    # o_ref: (rows, 128)     -- lane-dense flat view of the row-major (N, C) output
    r = r_ref[...]
    # bf16 x 3 split of the radii so the MXU expansion is (effectively) exact.
    h1 = r.astype(jnp.bfloat16)
    r1 = r - h1.astype(jnp.float32)
    h2 = r1.astype(jnp.bfloat16)
    h3 = (r1 - h2.astype(jnp.float32)).astype(jnp.bfloat16)
    e = e_ref[...]
    # R[p, l] = r[p, l // C], built on the otherwise-idle MXU.
    rr = (jnp.dot(h1, e, preferred_element_type=jnp.float32)
          + jnp.dot(h2, e, preferred_element_type=jnp.float32)
          + jnp.dot(h3, e, preferred_element_type=jnp.float32))
    d = rr - c_ref[...]
    o_ref[...] = jnp.exp((d * d) * neg_inv_width).astype(o_ref.dtype)


def _gaussian_basis_packed(r_flat, centers, neg_inv_width, *, tile_lanes, out_dtype):
    n = r_flat.shape[0]
    num_c = centers.shape[0]
    p = 128 // num_c                     # radii packed per 128-lane output row
    granule = 1024                       # keeps rows-per-block a multiple of 8 for any P

    # Tile heuristic: big enough to amortize grid-step overhead, small enough
    # for double-buffered VMEM on all generations, and >= ~8 grid steps so the
    # "parallel" axis can shard across v7x's two TensorCores.
    vmem_budget = 12 * 1024 * 1024
    per_radius = 2 * (4 * num_c + jnp.dtype(out_dtype).itemsize * num_c)
    cap = max(granule, (vmem_budget // per_radius) // granule * granule)
    tile = min(int(tile_lanes), cap)
    tile = min(tile, max(granule, _round_up(pl.cdiv(n, 8), granule)))
    tile = max(granule, (tile // granule) * granule)

    n_pad = _round_up(n, tile)
    if n_pad != n:
        r_flat = jnp.pad(r_flat, (0, n_pad - n))
    r2 = r_flat.reshape(n_pad // p, p)                      # contiguous, free reshape

    lane = jax.lax.broadcasted_iota(jnp.int32, (p, 128), 1)
    row = jax.lax.broadcasted_iota(jnp.int32, (p, 128), 0)
    e_mat = (lane // num_c == row).astype(jnp.bfloat16)     # (P, 128) 0/1 expansion
    c_tiled = jnp.tile(centers, p).reshape(1, 128)          # (1, 128) tiled centers

    rows_per_blk = tile // p
    out2 = pl.pallas_call(
        functools.partial(_gaussian_packed_kernel, neg_inv_width=neg_inv_width),
        out_shape=jax.ShapeDtypeStruct((n_pad // p, 128), out_dtype),
        grid=(n_pad // tile,),
        in_specs=[
            pl.BlockSpec((rows_per_blk, p), lambda i: (i, 0)),   # radii tile
            pl.BlockSpec((p, 128), lambda i: (0, 0)),            # expansion matrix (resident)
            pl.BlockSpec((1, 128), lambda i: (0, 0)),            # tiled centers (resident)
        ],
        out_specs=pl.BlockSpec((rows_per_blk, 128), lambda i: (i, 0)),
        compiler_params=pltpu.CompilerParams(
            dimension_semantics=("parallel",),
        ),
    )(r2, e_mat, c_tiled)

    out = out2.reshape(-1, num_c)      # same row-major byte order -> free reshape
    return out[:n] if n_pad != n else out


# ----------------------------------------------------------------------------
# Fallback: general C (does not divide 128) -> direct (tile_rows, C) blocks.
# ----------------------------------------------------------------------------
def _gaussian_rowmajor_kernel(r_ref, c_ref, o_ref, *, neg_inv_width):
    # r_ref: (tile, 1), c_ref: (1, C), o_ref: (tile, C)
    d = r_ref[...] - c_ref[...]
    o_ref[...] = jnp.exp((d * d) * neg_inv_width).astype(o_ref.dtype)


def _gaussian_basis_rowmajor(r_flat, centers, neg_inv_width, *, tile_rows, out_dtype):
    # TODO(synk): when C does not divide 128 the stores are lane-masked; this
    # path trades some store efficiency for full generality.
    n = r_flat.shape[0]
    num_c = centers.shape[0]
    granule = 8
    vmem_budget = 12 * 1024 * 1024
    c_pad = _round_up(num_c, 128)
    per_row = 2 * (4 * 128 + jnp.dtype(out_dtype).itemsize * c_pad)
    cap = max(granule, (vmem_budget // per_row) // granule * granule)
    tile = min(int(tile_rows), cap, max(granule, _round_up(pl.cdiv(n, 8), granule)))
    tile = max(granule, (tile // granule) * granule)

    n_pad = _round_up(n, tile)
    if n_pad != n:
        r_flat = jnp.pad(r_flat, (0, n_pad - n))
    r_col = r_flat.reshape(n_pad, 1)
    c_row = centers.reshape(1, num_c)

    out = pl.pallas_call(
        functools.partial(_gaussian_rowmajor_kernel, neg_inv_width=neg_inv_width),
        out_shape=jax.ShapeDtypeStruct((n_pad, num_c), out_dtype),
        grid=(n_pad // tile,),
        in_specs=[
            pl.BlockSpec((tile, 1), lambda i: (i, 0)),
            pl.BlockSpec((1, num_c), lambda i: (0, 0)),
        ],
        out_specs=pl.BlockSpec((tile, num_c), lambda i: (i, 0)),
        compiler_params=pltpu.CompilerParams(
            dimension_semantics=("parallel",),
        ),
    )(r_col, c_row)
    return out[:n] if n_pad != n else out


# ----------------------------------------------------------------------------
# Public API (matches GaussianBasis.forward semantics).
# ----------------------------------------------------------------------------
def gaussian_basis(r, centers, width, *, tile_lanes=32768, out_dtype=jnp.float32):
    """JAX/Pallas equivalent of GaussianBasis.forward; returns (N, C) with N = r.size."""
    # TODO(synk): `trainable=True` (nn.Parameter) is a training-time concern;
    # centers are simply passed in as an array each call.
    r_flat = jnp.reshape(r, (-1,)).astype(jnp.float32)
    c_flat = jnp.reshape(jnp.asarray(centers, dtype=jnp.float32), (-1,))
    num_c = c_flat.shape[0]
    # width is a static python float on the module; fold -1/width into a
    # trace-time constant (one fewer VPU op per element, no in-kernel divide).
    neg_inv_width = -1.0 / float(width)
    if num_c <= 128 and 128 % num_c == 0:
        return _gaussian_basis_packed(r_flat, c_flat, neg_inv_width,
                                      tile_lanes=tile_lanes, out_dtype=out_dtype)
    return _gaussian_basis_rowmajor(r_flat, c_flat, neg_inv_width,
                                    tile_rows=8192, out_dtype=out_dtype)


def gaussian_basis_ref(r, centers, width):
    """Pure-JAX reference matching the PyTorch forward exactly."""
    r_col = jnp.reshape(r, (-1, 1)).astype(jnp.float32)
    c_row = jnp.reshape(jnp.asarray(centers, dtype=jnp.float32), (1, -1))
    return jnp.exp(-((r_col - c_row) ** 2) / width)


if __name__ == "__main__":
    # --- main check: module hyperparameters, packed fast path (C = 16) ---
    NUM_CENTERS = 16
    WIDTH = 0.5
    CUTOFF = 5.0

    key = jax.random.PRNGKey(0)
    r = jax.random.uniform(key, (256,), dtype=jnp.float32, minval=0.0, maxval=CUTOFF)
    centers = jnp.linspace(0.0, CUTOFF, NUM_CENTERS, dtype=jnp.float32)

    out = jax.block_until_ready(gaussian_basis(r, centers, WIDTH))
    ref = gaussian_basis_ref(r, centers, WIDTH)
    assert out.shape == (256, NUM_CENTERS), out.shape
    assert jnp.allclose(out, ref, atol=1e-5, rtol=1e-5), (
        float(jnp.max(jnp.abs(out - ref)))
    )

    # --- secondary check: general-C fallback path (C = 12 does not divide 128) ---
    r_b = jax.random.uniform(jax.random.PRNGKey(0), (64,), dtype=jnp.float32,
                             minval=0.0, maxval=CUTOFF)
    centers_b = jnp.linspace(0.0, CUTOFF, 12, dtype=jnp.float32)
    out_b = jax.block_until_ready(gaussian_basis(r_b, centers_b, 0.25))
    ref_b = gaussian_basis_ref(r_b, centers_b, 0.25)
    assert out_b.shape == (64, 12), out_b.shape
    assert jnp.allclose(out_b, ref_b, atol=1e-5, rtol=1e-5), (
        float(jnp.max(jnp.abs(out_b - ref_b)))
    )

    print("KERNEL_OK")
</pallas_src>

<mosaic_0001>
module attributes {stable_mosaic.version = 11 : i64} {
  func.func @_gaussian_packed_kernel(%arg0: i32, %arg1: memref<128x8xf32, #tpu.memory_space<vmem>>, %arg2: memref<8x128xbf16, #tpu.memory_space<vmem>>, %arg3: memref<1x128xf32, #tpu.memory_space<vmem>>, %arg4: memref<128x128xf32, #tpu.memory_space<vmem>>) attributes {dimension_semantics = [#tpu.dimension_semantics<parallel>], iteration_bounds = array<i64: 1>, scalar_prefetch = 0 : i64, scratch_operands = 0 : i64, tpu.core_type = #tpu.core_type<tc>, window_params = [{transform_indices = @transform_0, window_bounds = array<i64: 128, 8>}, {pipeline_mode = #tpu.pipeline_mode<synchronous>, transform_indices = @transform_1, window_bounds = array<i64: 8, 128>}, {pipeline_mode = #tpu.pipeline_mode<synchronous>, transform_indices = @transform_2, window_bounds = array<i64: 1, 128>}, {transform_indices = @transform_3, window_bounds = array<i64: 128, 128>}]} {
    %c0 = arith.constant 0 : index
    %c0_0 = arith.constant 0 : index
    %0 = vector.load %arg1[%c0, %c0_0] : memref<128x8xf32, #tpu.memory_space<vmem>>, vector<128x8xf32>
    %1 = arith.truncf %0 : vector<128x8xf32> to vector<128x8xbf16>
    %2 = arith.extf %1 : vector<128x8xbf16> to vector<128x8xf32>
    %3 = arith.subf %0, %2 : vector<128x8xf32>
    %4 = arith.truncf %3 : vector<128x8xf32> to vector<128x8xbf16>
    %5 = arith.extf %4 : vector<128x8xbf16> to vector<128x8xf32>
    %6 = arith.subf %3, %5 : vector<128x8xf32>
    %7 = arith.truncf %6 : vector<128x8xf32> to vector<128x8xbf16>
    %c0_1 = arith.constant 0 : index
    %c0_2 = arith.constant 0 : index
    %8 = vector.load %arg2[%c0_1, %c0_2] : memref<8x128xbf16, #tpu.memory_space<vmem>>, vector<8x128xbf16>
    %cst = arith.constant dense<0.000000e+00> : vector<128x128xf32>
    %9 = tpu.matmul %1, %8, %cst {dimension_numbers = #tpu.dot_dimension_numbers<[1], [0], [0], [1], [0, 0, 1, 1], [], []>} : vector<128x8xbf16>, vector<8x128xbf16>, vector<128x128xf32> -> vector<128x128xf32>
    %cst_3 = arith.constant dense<0.000000e+00> : vector<128x128xf32>
    %10 = tpu.matmul %4, %8, %cst_3 {dimension_numbers = #tpu.dot_dimension_numbers<[1], [0], [0], [1], [0, 0, 1, 1], [], []>} : vector<128x8xbf16>, vector<8x128xbf16>, vector<128x128xf32> -> vector<128x128xf32>
    %11 = arith.addf %9, %10 : vector<128x128xf32>
    %cst_4 = arith.constant dense<0.000000e+00> : vector<128x128xf32>
    %12 = tpu.matmul %7, %8, %cst_4 {dimension_numbers = #tpu.dot_dimension_numbers<[1], [0], [0], [1], [0, 0, 1, 1], [], []>} : vector<128x8xbf16>, vector<8x128xbf16>, vector<128x128xf32> -> vector<128x128xf32>
    %13 = arith.addf %11, %12 : vector<128x128xf32>
    %c0_5 = arith.constant 0 : index
    %c0_6 = arith.constant 0 : index
    %14 = vector.load %arg3[%c0_5, %c0_6] : memref<1x128xf32, #tpu.memory_space<vmem>>, vector<1x128xf32>
    %15 = vector.broadcast %14 : vector<1x128xf32> to vector<128x128xf32>
    %16 = arith.subf %13, %15 : vector<128x128xf32>
    %17 = arith.mulf %16, %16 : vector<128x128xf32>
    %cst_7 = arith.constant -2.000000e+00 : f32
    %18 = vector.broadcast %cst_7 : f32 to vector<128x128xf32>
    %19 = arith.mulf %17, %18 : vector<128x128xf32>
    %20 = math.exp %19 : vector<128x128xf32>
    %c0_8 = arith.constant 0 : index
    %c0_9 = arith.constant 0 : index
    %21 = vector.load %arg4[%c0_8, %c0_9] : memref<128x128xf32, #tpu.memory_space<vmem>>, vector<128x128xf32>
    tpu.vector_store %arg4[%c0_8, %c0_9], %20 {strides = array<i32>} : memref<128x128xf32, #tpu.memory_space<vmem>>, vector<128x128xf32>,
    return
  }
  func.func @transform_0(%arg0: i32) -> (i32, i32) {
    %c0_i32 = arith.constant 0 : i32
    %c0_i32_0 = arith.constant 0 : i32
    return %arg0, %c0_i32 : i32, i32
  }
  func.func @transform_1(%arg0: i32) -> (i32, i32) {
    %c0_i32 = arith.constant 0 : i32
    %c0_i32_0 = arith.constant 0 : i32
    %c0_i32_1 = arith.constant 0 : i32
    return %c0_i32, %c0_i32_0 : i32, i32
  }
  func.func @transform_2(%arg0: i32) -> (i32, i32) {
    %c0_i32 = arith.constant 0 : i32
    %c0_i32_0 = arith.constant 0 : i32
    %c0_i32_1 = arith.constant 0 : i32
    return %c0_i32, %c0_i32_0 : i32, i32
  }
  func.func @transform_3(%arg0: i32) -> (i32, i32) {
    %c0_i32 = arith.constant 0 : i32
    %c0_i32_0 = arith.constant 0 : i32
    return %arg0, %c0_i32 : i32, i32
  }
}

</mosaic_0001>

<bundles_post_ra>
// kernel: tpu_custom_call.1
= control target key start
LH: loop header
LB: loop body
LE: loop exit
PB: predicated region body
PF: predicated region fallthrough
CT: control target
= control target key end

     0   :  { %vm202_vm0 = vcmask 1043456   ;;  %vm177_vm1 = vcmask 64512   ;;  %s867_s0 = inlined_call_operand.vmem [shape: f32[128,8], index: 0, kind: input, shape index: {}]   ;;  %s868_s1 = inlined_call_operand.vmem [shape: bf16[8,128], index: 1, kind: input, shape index: {}]   ;;  %s869_s2 = inlined_call_operand.vmem [shape: f32[1,128], index: 2, kind: input, shape index: {}]   ;;  %s870_s3 = inlined_call_operand.hbm [shape: f32[128,128], index: 3, kind: output, shape index: {}]  }
   0x1   :  { %v136_v0 = vld [vmem:[%s868_s1] sm:$0xf]  ;;  %v17_v2 = vld [vmem:[%s867_s0 + $0x8] sm:$0xff]  ;;  %v18_v8 = vld [vmem:[%s867_s0 + $0x10] sm:$0xff] }
   0x2   :  { %v16_v1 = vld [vmem:[%s867_s0] sm:$0xff]  ;;  %v696_v3 = vsel %vm202_vm0, %v136_v0, 0  ;;  %v33_v5 = vpack.c.bf16 %v17_v2, %v17_v2  ;;  %v29_v7 = vld [vmem:[%s867_s0 + $0x68] sm:$0xff]  ;;  %v19_v11 = vld [vmem:[%s867_s0 + $0x18] sm:$0xff]  ;;  %v34_v12 = vpack.c.bf16 %v18_v8, %v18_v8 }
   0x3   :  { %v32_v4 = vpack.c.bf16 %v16_v1, %v16_v1  ;;  %v28_v6 = vld [vmem:[%s867_s0 + $0x60] sm:$0xff]  ;;  %326 = vmatpush.bf16.msra.mxu1 %v696_v3  ;;  %213 = vmatpush.bf16.msra.mxu0 %v696_v3  ;;  %v711_v10 = vpack.c.bf16 %v29_v7, %v29_v7  ;;  %v35_v19 = vpack.c.bf16 %v19_v11, %v19_v11 }
   0x4   :  { %v709_v9 = vpack.c.bf16 %v28_v6, %v28_v6  ;;  %599 = vmatpush.bf16.msra.mxu3 %v696_v3  ;;  %v49_v14 = vunpack.c.l.bf16 %v33_v5  ;;  %v272_v16 = vunpack.c.l.b16 %v33_v5  ;;  %399 = vmatpush.bf16.msra.mxu2 %v696_v3 }
   0x5   :  { %v48_v13 = vunpack.c.l.bf16 %v32_v4  ;;  %v271_v15 = vunpack.c.l.b16 %v32_v4  ;;  %v61_v18 = vunpack.c.l.bf16 %v711_v10 }
   0x6   :  { %v60_v17 = vunpack.c.l.bf16 %v709_v9 }
   0x8   :  { %600 = vmatpush.bf16.msrb.mxu3 %v696_v3 }
   0x9   :  { %8 = vsyncpa [#allocation3], 0  ;;  %v287_v20 = vpack.c.b16 %v272_v16, %v271_v15  ;;  %v64_v21 = vsub.f32 %v16_v1, %v48_v13  ;;  %v65_v22 = vsub.f32 %v17_v2, %v49_v14  ;;  %v30_v23 = vld [vmem:[%s867_s0 + $0x70] sm:$0xff]  ;;  %v724_v24 = vsub.f32 %v28_v6, %v60_v17  ;;  %v31_v40 = vld [vmem:[%s867_s0 + $0x78] sm:$0xff]  ;;  %s563_s1 = sshll.u32 %s870_s3, 4  ;;  %s665_s22 = smov 128   ;;  %s564_s1 = int_to_ptr.hbm [resolvable:$true] %s563_s1 }
   0xa   :  { %v726_v25 = vsub.f32 %v29_v7, %v61_v18  ;;  %v50_v26 = vunpack.c.l.bf16 %v34_v12  ;;  %v51_v29 = vunpack.c.l.bf16 %v35_v19  ;;  %v737_v32 = vpack.c.bf16 %v30_v23, %v30_v23  ;;  %v20_v55 = vld [vmem:[%s867_s0 + $0x20] sm:$0xff]  ;;  %v21_v56 = vld [vmem:[%s867_s0 + $0x28] sm:$0xff]  ;;  %s666_s23 = smov 8  }
   0xb   :  { %583 = vmatmul.msk.bf16.vlgmr.msra.gmra.mxu1 %vm177_vm1, %v287_v20  ;;  %v80_v27 = vpack.c.bf16 %v64_v21, %v64_v21  ;;  %v81_v28 = vpack.c.bf16 %v65_v22, %v65_v22  ;;  %v731_v30 = vpack.c.bf16 %v724_v24, %v724_v24  ;;  %v745_v47 = vpack.c.bf16 %v31_v40, %v31_v40  ;;  %v22_v20 = vld [vmem:[%s867_s0 + $0x30] sm:$0xff] }
   0xc   :  { %v735_v31 = vpack.c.bf16 %v726_v25, %v726_v25  ;;  %v66_v39 = vsub.f32 %v18_v8, %v50_v26  ;;  %v67_v44 = vsub.f32 %v19_v11, %v51_v29  ;;  %v62_v48 = vunpack.c.l.bf16 %v737_v32 }
   0xd   :  { %v153_v33 = vunpack.c.l.b16 %v80_v27  ;;  %v154_v34 = vunpack.c.l.b16 %v81_v28  ;;  %v96_v35 = vunpack.c.l.bf16 %v80_v27  ;;  %v97_v36 = vunpack.c.l.bf16 %v81_v28 }
   0xe   :  { %v165_v37 = vunpack.c.l.b16 %v731_v30  ;;  %v166_v38 = vunpack.c.l.b16 %v735_v31  ;;  %v273_v49 = vunpack.c.l.b16 %v34_v12  ;;  %v274_v50 = vunpack.c.l.b16 %v35_v19 }
   0xf   :  { %v169_v41 = vpack.c.b16 %v154_v34, %v153_v33  ;;  %v112_v42 = vsub.f32 %v64_v21, %v96_v35  ;;  %v113_v43 = vsub.f32 %v65_v22, %v97_v36  ;;  %v82_v51 = vpack.c.bf16 %v66_v39, %v66_v39  ;;  %v23_v21 = vld [vmem:[%s867_s0 + $0x38] sm:$0xff] }
  0x10   :  { %v175_v45 = vpack.c.b16 %v166_v38, %v165_v37  ;;  %v83_v52 = vpack.c.bf16 %v67_v44, %v67_v44  ;;  %v63_v53 = vunpack.c.l.bf16 %v745_v47  ;;  %v751_v54 = vsub.f32 %v30_v23, %v62_v48 }
  0x11   :  { %575 = vmatmul.msk.bf16.vlgmr.msra.gmra.mxu0 %vm177_vm1, %v169_v41  ;;  %v128_v46 = vpack.c.bf16 %v113_v43, %v112_v42  ;;  %v288_v58 = vpack.c.b16 %v274_v50, %v273_v49  ;;  %v98_v60 = vunpack.c.l.bf16 %v82_v51  ;;  %v36_v63 = vpack.c.bf16 %v20_v55, %v20_v55  ;;  %v25_v50 = vld [vmem:[%s867_s0 + $0x48] sm:$0xff] }
  0x12   :  { %581 = vmatmul.msk.bf16.vlgmr.msra.gmra.mxu3 %vm177_vm1, %v175_v45  ;;  %v760_v57 = vsub.f32 %v31_v40, %v63_v53  ;;  %v764_v59 = vpack.c.bf16 %v751_v54, %v751_v54  ;;  %v99_v62 = vunpack.c.l.bf16 %v83_v52  ;;  %v37_v0 = vpack.c.bf16 %v21_v56, %v21_v56 }
  0x13   :  { %591 = vmatmul.msk.bf16.vlgmr.msra.gmra.mxu2 %vm177_vm1, %v128_v46  ;;  %601 = vmatpush.bf16.msra.mxu3 %v696_v3  ;;  %v155_v1 = vunpack.c.l.b16 %v82_v51  ;;  %v156_v2 = vunpack.c.l.b16 %v83_v52  ;;  %v114_v5 = vsub.f32 %v66_v39, %v98_v60  ;;  %v52_v7 = vunpack.c.l.bf16 %v36_v63 }
  0x14   :  { %v768_v61 = vpack.c.bf16 %v760_v57, %v760_v57  ;;  %v167_v3 = vunpack.c.l.b16 %v764_v59  ;;  %v115_v6 = vsub.f32 %v67_v44, %v99_v62  ;;  %v53_v8 = vunpack.c.l.bf16 %v37_v0 }
  0x15   :  { %v170_v11 = vpack.c.b16 %v156_v2, %v155_v1  ;;  %v68_v14 = vsub.f32 %v20_v55, %v52_v7  ;;  %v275_v16 = vunpack.c.l.b16 %v36_v63  ;;  %v276_v17 = vunpack.c.l.b16 %v37_v0 }
  0x16   :  { %v168_v4 = vunpack.c.l.b16 %v768_v61  ;;  %v129_v13 = vpack.c.bf16 %v115_v6, %v114_v5  ;;  %v69_v15 = vsub.f32 %v21_v56, %v53_v8  ;;  %v38_v22 = vpack.c.bf16 %v22_v20, %v22_v20 }
  0x17   :  { %v84_v18 = vpack.c.bf16 %v68_v14, %v68_v14  ;;  %v289_v23 = vpack.c.b16 %v276_v17, %v275_v16  ;;  %v39_v28 = vpack.c.bf16 %v23_v21, %v23_v21  ;;  %v108_v29 = vunpack.c.l.bf16 %v731_v30 }
  0x18   :  { %v176_v12 = vpack.c.b16 %v168_v4, %v167_v3  ;;  %v85_v19 = vpack.c.bf16 %v69_v15, %v69_v15  ;;  %v109_v33 = vunpack.c.l.bf16 %v735_v31  ;;  %v283_v36 = vunpack.c.l.b16 %v709_v9 }
  0x19   :  { %v100_v26 = vunpack.c.l.bf16 %v84_v18  ;;  %v157_v34 = vunpack.c.l.b16 %v84_v18  ;;  %v284_v37 = vunpack.c.l.b16 %v711_v10  ;;  %v54_v40 = vunpack.c.l.bf16 %v38_v22 }
  0x1a   :  { %v101_v27 = vunpack.c.l.bf16 %v85_v19  ;;  %v158_v35 = vunpack.c.l.b16 %v85_v19  ;;  %v55_v41 = vunpack.c.l.bf16 %v39_v28  ;;  %v788_v42 = vsub.f32 %v724_v24, %v108_v29 }
  0x1b   :  { %584 = vmatmul.msk.bf16.gmra.mxu1 %vm177_vm1, %v288_v58  ;;  %v116_v38 = vsub.f32 %v68_v14, %v100_v26  ;;  %v791_v43 = vsub.f32 %v726_v25, %v109_v33  ;;  %v293_v31 = vpack.c.b16 %v284_v37, %v283_v36  ;;  %v70_v45 = vsub.f32 %v22_v20, %v54_v40  ;;  %v24_v25 = vld [vmem:[%s867_s0 + $0x40] sm:$0xff] }
  0x1c   :  { %v117_v39 = vsub.f32 %v69_v15, %v101_v27  ;;  %v171_v30 = vpack.c.b16 %v158_v35, %v157_v34  ;;  %v71_v46 = vsub.f32 %v23_v21, %v55_v41  ;;  %v277_v10 = vunpack.c.l.b16 %v38_v22 }
  0x1d   :  { %v134_v9 = vpack.c.bf16 %v791_v43, %v788_v42  ;;  %v278_v48 = vunpack.c.l.b16 %v39_v28  ;;  %v86_v24 = vpack.c.bf16 %v70_v45, %v70_v45  ;;  %v40_v55 = vpack.c.bf16 %v24_v25, %v24_v25 }
  0x1e   :  { %v130_v44 = vpack.c.bf16 %v117_v39, %v116_v38  ;;  %v87_v49 = vpack.c.bf16 %v71_v46, %v71_v46  ;;  %v41_v56 = vpack.c.bf16 %v25_v50, %v25_v50  ;;  %v285_v62 = vunpack.c.l.b16 %v737_v32 }
  0x1f   :  { %v290_v51 = vpack.c.b16 %v278_v48, %v277_v10  ;;  %v102_v52 = vunpack.c.l.bf16 %v86_v24  ;;  %v159_v58 = vunpack.c.l.b16 %v86_v24  ;;  %v286_v63 = vunpack.c.l.b16 %v745_v47 }
  0x20   :  { %v103_v53 = vunpack.c.l.bf16 %v87_v49  ;;  %v160_v60 = vunpack.c.l.b16 %v87_v49  ;;  %v56_v2 = vunpack.c.l.bf16 %v40_v55  ;;  %v57_v3 = vunpack.c.l.bf16 %v41_v56 }
  0x21   :  { %576 = vmatmul.msk.bf16.gmra.mxu0 %vm177_vm1, %v170_v11  ;;  %v118_v0 = vsub.f32 %v70_v45, %v102_v52  ;;  %v110_v4 = vunpack.c.l.bf16 %v764_v59  ;;  %v111_v5 = vunpack.c.l.bf16 %v768_v61  ;;  %v294_v7 = vpack.c.b16 %v286_v63, %v285_v62 }
  0x22   :  { %582 = vmatmul.msk.bf16.gmra.mxu3 %vm177_vm1, %v176_v12  ;;  %v119_v1 = vsub.f32 %v71_v46, %v103_v53  ;;  %v172_v6 = vpack.c.b16 %v160_v60, %v159_v58  ;;  %v72_v32 = vsub.f32 %v24_v25, %v56_v2  ;;  %v279_v14 = vunpack.c.l.b16 %v40_v55  ;;  %v833_v25 = vld [vmem:[%s869_s2] ss:$0 sm:$0xff]  ;;  %s664_s2 = smov [#allocation2]  }
  0x23   :  { %592 = vmatmul.msk.bf16.gmra.mxu2 %vm177_vm1, %v129_v13  ;;  %v126_v8 = vsub.f32 %v751_v54, %v110_v4  ;;  %v127_v11 = vsub.f32 %v760_v57, %v111_v5  ;;  %v73_v13 = vsub.f32 %v25_v50, %v57_v3  ;;  %v280_v15 = vunpack.c.l.b16 %v41_v56  ;;  %v26_v54 = vld [vmem:[%s867_s0 + $0x50] sm:$0xff]  ;;  %v27_v57 = vld [vmem:[%s867_s0 + $0x58] sm:$0xff]  ;;  %s561_s19 = sshll.u32 %s664_s2, 4  ;;  %s562_s19 = int_to_ptr.vmem [resolvable:$true] %s561_s19 }
  0x24   :  { %v131_v12 = vpack.c.bf16 %v119_v1, %v118_v0  ;;  %v88_v59 = vpack.c.bf16 %v72_v32, %v72_v32  ;;  %v42_v19 = vpack.c.bf16 %v26_v54, %v26_v54  ;;  %v43_v20 = vpack.c.bf16 %v27_v57, %v27_v57 }
  0x25   :  { %v135_v47 = vpack.c.bf16 %v127_v11, %v126_v8  ;;  %v89_v61 = vpack.c.bf16 %v73_v13, %v73_v13  ;;  %v291_v16 = vpack.c.b16 %v280_v15, %v279_v14 }
  0x26   :  { %v104_v17 = vunpack.c.l.bf16 %v88_v59  ;;  %v161_v21 = vunpack.c.l.b16 %v88_v59  ;;  %v58_v27 = vunpack.c.l.bf16 %v42_v19  ;;  %v59_v28 = vunpack.c.l.bf16 %v43_v20 }
  0x27   :  { %v105_v18 = vunpack.c.l.bf16 %v89_v61  ;;  %v162_v22 = vunpack.c.l.b16 %v89_v61  ;;  %v281_v36 = vunpack.c.l.b16 %v42_v19  ;;  %v282_v37 = vunpack.c.l.b16 %v43_v20 }
  0x28   :  { %v74_v34 = vsub.f32 %v26_v54, %v58_v27  ;;  %v75_v35 = vsub.f32 %v27_v57, %v59_v28 }
  0x29   :  { %v121_v26 = vsub.f32 %v73_v13, %v105_v18  ;;  %v173_v29 = vpack.c.b16 %v162_v22, %v161_v21  ;;  %v292_v40 = vpack.c.b16 %v282_v37, %v281_v36 }
  0x2a   :  { %v90_v38 = vpack.c.bf16 %v74_v34, %v74_v34  ;;  %v91_v39 = vpack.c.bf16 %v75_v35, %v75_v35 }
  0x2b   :  { %585 = vmatmul.msk.bf16.gmra.mxu1 %vm177_vm1, %v289_v23  ;;  %v120_v23 = vsub.f32 %v72_v32, %v104_v17 }
  0x2c   :  { %v106_v41 = vunpack.c.l.bf16 %v90_v38  ;;  %v107_v42 = vunpack.c.l.bf16 %v91_v39  ;;  %v163_v43 = vunpack.c.l.b16 %v90_v38 }
  0x2d   :  { %v132_v33 = vpack.c.bf16 %v121_v26, %v120_v23 }
  0x31   :  { %577 = vmatmul.msk.bf16.gmra.mxu0 %vm177_vm1, %v171_v30  ;;  %v164_v30 = vunpack.c.l.b16 %v91_v39 }
  0x32   :  { %589 = vmatmul.msk.bf16.vlgmr.msrb.gmra.mxu3 %vm177_vm1, %v293_v31  ;;  %v122_v31 = vsub.f32 %v74_v34, %v106_v41 }
  0x33   :  { %593 = vmatmul.msk.bf16.gmra.mxu2 %vm177_vm1, %v130_v44  ;;  %v123_v44 = vsub.f32 %v75_v35, %v107_v42  ;;  %v174_v45 = vpack.c.b16 %v164_v30, %v163_v43 }
  0x35   :  { %v133_v46 = vpack.c.bf16 %v123_v44, %v122_v31 }
  0x3b   :  { %586 = vmatmul.msk.bf16.gmra.mxu1 %vm177_vm1, %v290_v51 }
  0x41   :  { %578 = vmatmul.msk.bf16.gmra.mxu0 %vm177_vm1, %v172_v6 }
  0x42   :  { %590 = vmatmul.msk.bf16.gmra.mxu3 %vm177_vm1, %v294_v7 }
  0x43   :  { %594 = vmatmul.msk.bf16.gmra.mxu2 %vm177_vm1, %v131_v12 }
  0x4b   :  { %587 = vmatmul.msk.bf16.gmra.mxu1 %vm177_vm1, %v291_v16 }
  0x51   :  { %579 = vmatmul.msk.bf16.gmra.mxu0 %vm177_vm1, %v173_v29 }
  0x52   :  { %597 = vmatmul.msk.bf16.vlgmr.msra.gmra.mxu3 %vm177_vm1, %v134_v9 }
  0x53   :  { %595 = vmatmul.msk.bf16.gmra.mxu2 %vm177_vm1, %v132_v33 }
  0x5b   :  { %588 = vmatmul.msk.bf16.gmra.mxu1 %vm177_vm1, %v292_v40 }
  0x61   :  { %580 = vmatmul.msk.bf16.gmra.mxu0 %vm177_vm1, %v174_v45 }
  0x62   :  { %598 = vmatmul.msk.bf16.gmra.mxu3 %vm177_vm1, %v135_v47 }
  0x63   :  { %596 = vmatmul.msk.bf16.gmra.mxu2 %vm177_vm1, %v133_v46 }
  0x88   :  { %v328_v9 = vpop.f32.mrf.mxu1 }
  0x8e   :  { %v215_v10 = vpop.f32.mrf.mxu0 }
  0x8f   :  { %v329_v24 = vadd.f32 %v328_v9, %v215_v10 }
  0x90   :  { %v330_v48 = vpop.f32.mrf.mxu1 }
  0x95   :  { %v828_v49 = vpop.f32.mrf.mxu3 }
  0x96   :  { %v217_v50 = vpop.f32.mrf.mxu0  ;;  %v401_v51 = vpop.f32.mrf.mxu2 }
  0x97   :  { %v441_v52 = vadd.f32 %v401_v51, %v329_v24  ;;  %v331_v58 = vadd.f32 %v330_v48, %v217_v50 }
  0x98   :  { %v333_v53 = vpop.f32.mrf.mxu1 }
  0x99   :  { %v461_v55 = vsub.f32 %v441_v52, %v833_v25 }
  0x9b   :  { %v477_v56 = vmul.f32 %v461_v55, %v461_v55 }
  0x9d   :  { %v493_v60 = vmul.f32 -2.0, %v477_v56  ;;  %v836_v62 = vpop.f32.mrf.mxu3 }
  0x9e   :  { %v220_v63 = vpop.f32.mrf.mxu0  ;;  %v403_v0 = vpop.f32.mrf.mxu2 }
  0x9f   :  { %v509_v1 = vmul.f32 1.442695, %v493_v60  ;;  %v442_v2 = vadd.f32 %v403_v0, %v331_v58  ;;  %v334_v5 = vadd.f32 %v333_v53, %v220_v63 }
  0xa0   :  { %v335_v3 = vpop.f32.mrf.mxu1 }
  0xa1   :  { %606 = vpow2.f32 %v509_v1  ;;  %v462_v4 = vsub.f32 %v442_v2, %v833_v25 }
  0xa3   :  { %v478_v6 = vmul.f32 %v462_v4, %v462_v4 }
  0xa5   :  { %v494_v7 = vmul.f32 -2.0, %v478_v6  ;;  %v839_v8 = vpop.f32.mrf.mxu3 }
  0xa6   :  { %v222_v11 = vpop.f32.mrf.mxu0  ;;  %v406_v12 = vpop.f32.mrf.mxu2 }
  0xa7   :  { %v607_v32 = vpop.eup %606  ;;  %v511_v13 = vmul.f32 1.442695, %v494_v7  ;;  %v443_v47 = vadd.f32 %v406_v12, %v334_v5  ;;  %v336_v61 = vadd.f32 %v335_v3, %v222_v11 }
  0xa8   :  { %541 = vst [vmem:[#allocation2] sm:$0xff] %v607_v32  ;;  %v338_v14 = vpop.f32.mrf.mxu1 }
  0xa9   :  { %608 = vpow2.f32 %v511_v13  ;;  %v463_v15 = vsub.f32 %v443_v47, %v833_v25 }
  0xab   :  { %v479_v59 = vmul.f32 %v463_v15, %v463_v15 }
  0xad   :  { %v495_v54 = vmul.f32 -2.0, %v479_v59  ;;  %v842_v57 = vpop.f32.mrf.mxu3 }
  0xae   :  { %v225_v16 = vpop.f32.mrf.mxu0  ;;  %v408_v17 = vpop.f32.mrf.mxu2 }
  0xaf   :  { %v609_v18 = vpop.eup %608  ;;  %v513_v19 = vmul.f32 1.442695, %v495_v54  ;;  %v444_v20 = vadd.f32 %v408_v17, %v336_v61  ;;  %v339_v23 = vadd.f32 %v338_v14, %v225_v16 }
  0xb0   :  { %542 = vst [vmem:[#allocation2 + $0x8] sm:$0xff] %v609_v18  ;;  %v340_v21 = vpop.f32.mrf.mxu1 }
  0xb1   :  { %610 = vpow2.f32 %v513_v19  ;;  %v464_v22 = vsub.f32 %v444_v20, %v833_v25 }
  0xb3   :  { %v480_v26 = vmul.f32 %v464_v22, %v464_v22 }
  0xb5   :  { %v496_v27 = vmul.f32 -2.0, %v480_v26  ;;  %v358_v28 = vpop.f32.mrf.mxu3 }
  0xb6   :  { %v227_v29 = vpop.f32.mrf.mxu0  ;;  %v411_v33 = vpop.f32.mrf.mxu2  ;;  %v359_v13 = vadd.f32 %v358_v28, %v828_v49 }
  0xb7   :  { %v611_v34 = vpop.eup %610  ;;  %v515_v35 = vmul.f32 1.442695, %v496_v27  ;;  %v445_v36 = vadd.f32 %v411_v33, %v339_v23  ;;  %v341_v40 = vadd.f32 %v340_v21, %v227_v29 }
  0xb8   :  { %543 = vst [vmem:[#allocation2 + $0x10] sm:$0xff] %v611_v34  ;;  %v343_v38 = vpop.f32.mrf.mxu1 }
  0xb9   :  { %612 = vpow2.f32 %v515_v35  ;;  %v465_v37 = vsub.f32 %v445_v36, %v833_v25 }
  0xbb   :  { %v481_v39 = vmul.f32 %v465_v37, %v465_v37 }
  0xbd   :  { %v497_v41 = vmul.f32 -2.0, %v481_v39  ;;  %v360_v42 = vpop.f32.mrf.mxu3 }
  0xbe   :  { %v230_v43 = vpop.f32.mrf.mxu0  ;;  %v413_v30 = vpop.f32.mrf.mxu2  ;;  %v361_v23 = vadd.f32 %v360_v42, %v836_v62 }
  0xbf   :  { %v613_v31 = vpop.eup %612  ;;  %v517_v44 = vmul.f32 1.442695, %v497_v41  ;;  %v446_v45 = vadd.f32 %v413_v30, %v341_v40  ;;  %v344_v9 = vadd.f32 %v343_v38, %v230_v43 }
  0xc0   :  { %544 = vst [vmem:[#allocation2 + $0x18] sm:$0xff] %v613_v31  ;;  %v345_v48 = vpop.f32.mrf.mxu1 }
  0xc1   :  { %614 = vpow2.f32 %v517_v44  ;;  %v466_v46 = vsub.f32 %v446_v45, %v833_v25 }
  0xc3   :  { %v482_v10 = vmul.f32 %v466_v46, %v466_v46 }
  0xc5   :  { %v498_v24 = vmul.f32 -2.0, %v482_v10  ;;  %v363_v50 = vpop.f32.mrf.mxu3 }
  0xc6   :  { %v232_v51 = vpop.f32.mrf.mxu0  ;;  %v416_v52 = vpop.f32.mrf.mxu2  ;;  %v364_v30 = vadd.f32 %v363_v50, %v839_v8 }
  0xc7   :  { %v615_v53 = vpop.eup %614  ;;  %v519_v55 = vmul.f32 1.442695, %v498_v24  ;;  %v447_v56 = vadd.f32 %v416_v52, %v344_v9  ;;  %v346_v63 = vadd.f32 %v345_v48, %v232_v51 }
  0xc8   :  { %545 = vst [vmem:[#allocation2 + $0x20] sm:$0xff] %v615_v53  ;;  %v348_v1 = vpop.f32.mrf.mxu1 }
  0xc9   :  { %616 = vpow2.f32 %v519_v55  ;;  %v467_v58 = vsub.f32 %v447_v56, %v833_v25 }
  0xcb   :  { %v483_v60 = vmul.f32 %v467_v58, %v467_v58 }
  0xcd   :  { %v499_v0 = vmul.f32 -2.0, %v483_v60  ;;  %v848_v2 = vpop.f32.mrf.mxu3 }
  0xce   :  { %v235_v3 = vpop.f32.mrf.mxu0  ;;  %v418_v4 = vpop.f32.mrf.mxu2  ;;  %v366_v58 = vadd.f32 %v848_v2, %v842_v57 }
  0xcf   :  { %v617_v5 = vpop.eup %616  ;;  %v521_v6 = vmul.f32 1.442695, %v499_v0  ;;  %v448_v7 = vadd.f32 %v418_v4, %v346_v63  ;;  %v349_v12 = vadd.f32 %v348_v1, %v235_v3 }
  0xd0   :  { %546 = vst [vmem:[#allocation2 + $0x28] sm:$0xff] %v617_v5  ;;  %v350_v18 = vpop.f32.mrf.mxu1 }
  0xd1   :  { %618 = vpow2.f32 %v521_v6  ;;  %v468_v11 = vsub.f32 %v448_v7, %v833_v25 }
  0xd3   :  { %v484_v32 = vmul.f32 %v468_v11, %v468_v11 }
  0xd5   :  { %v500_v47 = vmul.f32 -2.0, %v484_v32  ;;  %v431_v14 = vpop.f32.mrf.mxu3 }
  0xd6   :  { %v453_v15 = vadd.f32 %v431_v14, %v359_v13  ;;  %v237_v59 = vpop.f32.mrf.mxu0  ;;  %v421_v61 = vpop.f32.mrf.mxu2 }
  0xd7   :  { %v619_v54 = vpop.eup %618  ;;  %v523_v16 = vmul.f32 1.442695, %v500_v47  ;;  %v449_v17 = vadd.f32 %v421_v61, %v349_v12  ;;  %v351_v26 = vadd.f32 %v350_v18, %v237_v59 }
  0xd8   :  { %547 = vst [vmem:[#allocation2 + $0x30] sm:$0xff] %v619_v54  ;;  %v473_v19 = vsub.f32 %v453_v15, %v833_v25  ;;  %v353_v41 = vpop.f32.mrf.mxu1 }
  0xd9   :  { %620 = vpow2.f32 %v523_v16  ;;  %v469_v20 = vsub.f32 %v449_v17, %v833_v25 }
  0xda   :  { %v489_v21 = vmul.f32 %v473_v19, %v473_v19 }
  0xdb   :  { %v485_v22 = vmul.f32 %v469_v20, %v469_v20 }
  0xdc   :  { %v505_v49 = vmul.f32 -2.0, %v489_v21 }
  0xdd   :  { %v501_v27 = vmul.f32 -2.0, %v485_v22  ;;  %v433_v28 = vpop.f32.mrf.mxu3 }
  0xde   :  { %v533_v29 = vmul.f32 1.442695, %v505_v49  ;;  %v454_v33 = vadd.f32 %v433_v28, %v361_v23  ;;  %v423_v34 = vpop.f32.mrf.mxu2  ;;  %v240_v39 = vpop.f32.mrf.mxu0 }
  0xdf   :  { %v621_v35 = vpop.eup %620  ;;  %v525_v36 = vmul.f32 1.442695, %v501_v27  ;;  %v450_v37 = vadd.f32 %v423_v34, %v351_v26  ;;  %v354_v42 = vadd.f32 %v353_v41, %v240_v39 }
  0xe0   :  { %548 = vst [vmem:[#allocation2 + $0x38] sm:$0xff] %v621_v35  ;;  %622 = vpow2.f32 %v533_v29  ;;  %v474_v38 = vsub.f32 %v454_v33, %v833_v25  ;;  %v355_v60 = vpop.f32.mrf.mxu1 }
  0xe1   :  { %624 = vpow2.f32 %v525_v36  ;;  %v470_v40 = vsub.f32 %v450_v37, %v833_v25 }
  0xe2   :  { %v490_v62 = vmul.f32 %v474_v38, %v474_v38 }
  0xe3   :  { %v486_v43 = vmul.f32 %v470_v40, %v470_v40 }
  0xe4   :  { %v506_v31 = vmul.f32 -2.0, %v490_v62 }
  0xe5   :  { %v502_v44 = vmul.f32 -2.0, %v486_v43  ;;  %v436_v45 = vpop.f32.mrf.mxu3 }
  0xe6   :  { %v623_v46 = vpop.eup %622  ;;  %v535_v9 = vmul.f32 1.442695, %v506_v31  ;;  %v455_v10 = vadd.f32 %v436_v45, %v364_v30  ;;  %v426_v48 = vpop.f32.mrf.mxu2 }
  0xe7   :  { %v625_v24 = vpop.eup %624  ;;  %553 = vst [vmem:[#allocation2 + $0x60] sm:$0xff] %v623_v46  ;;  %v527_v51 = vmul.f32 1.442695, %v502_v44  ;;  %v451_v52 = vadd.f32 %v426_v48, %v354_v42  ;;  %v242_v8 = vpop.f32.mrf.mxu0 }
  0xe8   :  { %549 = vst [vmem:[#allocation2 + $0x40] sm:$0xff] %v625_v24  ;;  %626 = vpow2.f32 %v535_v9  ;;  %v475_v53 = vsub.f32 %v455_v10, %v833_v25  ;;  %v356_v0 = vadd.f32 %v355_v60, %v242_v8 }
  0xe9   :  { %628 = vpow2.f32 %v527_v51  ;;  %v471_v55 = vsub.f32 %v451_v52, %v833_v25 }
  0xea   :  { %v491_v56 = vmul.f32 %v475_v53, %v475_v53 }
  0xeb   :  { %v487_v50 = vmul.f32 %v471_v55, %v471_v55 }
  0xec   :  { %v507_v63 = vmul.f32 -2.0, %v491_v56 }
  0xed   :  { %v503_v1 = vmul.f32 -2.0, %v487_v50  ;;  %v438_v3 = vpop.f32.mrf.mxu3 }
  0xee   :  { %v627_v4 = vpop.eup %626  ;;  %v537_v5 = vmul.f32 1.442695, %v507_v63  ;;  %v456_v6 = vadd.f32 %v438_v3, %v366_v58  ;;  %v428_v7 = vpop.f32.mrf.mxu2 }
  0xef   :  { %v629_v11 = vpop.eup %628  ;;  %554 = vst [vmem:[#allocation2 + $0x68] sm:$0xff] %v627_v4  ;;  %v529_v12 = vmul.f32 1.442695, %v503_v1  ;;  %v452_v32 = vadd.f32 %v428_v7, %v356_v0 }
  0xf0   :  { %550 = vst [vmem:[#allocation2 + $0x48] sm:$0xff] %v629_v11  ;;  %630 = vpow2.f32 %v537_v5  ;;  %v476_v13 = vsub.f32 %v456_v6, %v833_v25 }
  0xf1   :  { %632 = vpow2.f32 %v529_v12  ;;  %v472_v57 = vsub.f32 %v452_v32, %v833_v25 }
  0xf2   :  { %v492_v2 = vmul.f32 %v476_v13, %v476_v13 }
  0xf3   :  { %v488_v47 = vmul.f32 %v472_v57, %v472_v57 }
  0xf4   :  { %v508_v14 = vmul.f32 -2.0, %v492_v2 }
  0xf5   :  { %v504_v15 = vmul.f32 -2.0, %v488_v47 }
  0xf6   :  { %v631_v59 = vpop.eup %630  ;;  %v539_v61 = vmul.f32 1.442695, %v508_v14 }
  0xf7   :  { %v633_v54 = vpop.eup %632  ;;  %555 = vst [vmem:[#allocation2 + $0x70] sm:$0xff] %v631_v59  ;;  %v531_v16 = vmul.f32 1.442695, %v504_v15 }
  0xf8   :  { %551 = vst [vmem:[#allocation2 + $0x50] sm:$0xff] %v633_v54  ;;  %634 = vpow2.f32 %v539_v61 }
  0xf9   :  { %636 = vpow2.f32 %v531_v16 }
  0xfe   :  { %v635_v25 = vpop.eup %634 }
  0xff   :  { %v637_v17 = vpop.eup %636  ;;  %556 = vst [vmem:[#allocation2 + $0x78] sm:$0xff] %v635_v25 }
 0x100   :  { %552 = vst [vmem:[#allocation2 + $0x58] sm:$0xff] %v637_v17 }
 0x101   :  { %569 = dma.vmem_to_hbm [thread:$0]  %s562_s19, 2048, %s564_s1, [#allocation3], %s665_s22, %s665_s22, %s666_s23  }
 0x102   :  { %662 = dma.done.wait [#allocation3], 2048  }
 0x103   :  { %663 = vsyncadd [#allocation3], 4294965248 }
 0x104   :  { %574 = vsyncpa [#allocation3], 1 }

</bundles_post_ra>
